<compile_context>
chip_gen: v5e
topology: v5e:2x2
jax: 0.10.0
libtpu: 0.0.40
codegen_flags: <defaults>
</compile_context>

<pallas_src>
import math

import jax
import jax.numpy as jnp
import numpy as np
from jax.experimental import pallas as pl
from jax.experimental.pallas import tpu as pltpu


_TARGET_BLOCK_BYTES = 4 * 1024 * 1024   # ~4 MiB blocks: in+out double-buffered
                                        # = 16 MiB, safe under 32 MiB scoped VMEM.
_MAX_LANES = 8192                       # cap on lane-dense output width.


def _identity_kernel(x_ref, o_ref):
    # Straight VMEM copy of the current tile (output HBM aliases input HBM).
    o_ref[...] = x_ref[...]


def _choose_tiling(shape, dtype):
    """Pick a (rows, cols, tile_rows) 2-D view with a lane-dense last dim.

    Returns None when no multiple-of-128 factorization of the element count
    exists; caller then falls back to a single whole-array block.
    """
    n = math.prod(shape)
    itemsize = np.dtype(dtype).itemsize

    cols = 0
    for c in range(min(_MAX_LANES, n) // 128, 0, -1):
        cand = c * 128
        if n % cand == 0:
            cols = cand
            break
    if cols == 0:
        return None

    rows = n // cols
    # Sublane packing: 8 rows for 32-bit, 16 for bf16, 32 for int8.
    pack = 8 * max(1, 4 // itemsize)
    target_rows = max(pack, _TARGET_BLOCK_BYTES // (cols * itemsize))
    tile_rows = rows   # full-extent block is always legal
    for d in range(min(target_rows, rows), 0, -1):
        if rows % d == 0 and (d % pack == 0 or d == rows):
            tile_rows = d
            break
    return rows, cols, tile_rows


def node_id_forward(x):
    """Identity forward of NodeId (zero-copy via output/input aliasing)."""
    orig_shape = x.shape
    tiling = _choose_tiling(x.shape, x.dtype)

    if tiling is None:
        # Tiny / oddly-sized input: single whole-array block in VMEM.
        # TODO(synk): huge arrays whose element count has no 128-multiple
        # factor would need a masked ragged-tail path instead of one block.
        return pl.pallas_call(
            _identity_kernel,
            out_shape=jax.ShapeDtypeStruct(x.shape, x.dtype),
            input_output_aliases={0: 0},
        )(x)

    rows, cols, tile_rows = tiling
    x2d = x.reshape(rows, cols)          # metadata-only reshape (contiguous)

    out2d = pl.pallas_call(
        _identity_kernel,
        out_shape=jax.ShapeDtypeStruct((rows, cols), x.dtype),
        grid_spec=pltpu.PrefetchScalarGridSpec(
            num_scalar_prefetch=0,
            grid=(rows // tile_rows,),
            in_specs=[pl.BlockSpec((tile_rows, cols), lambda i: (i, 0))],
            out_specs=pl.BlockSpec((tile_rows, cols), lambda i: (i, 0)),
        ),
        input_output_aliases={0: 0},      # output HBM buffer == input buffer
        compiler_params=pltpu.CompilerParams(
            dimension_semantics=("parallel",),   # shard grid over v7x's 2 TCs
            vmem_limit_bytes=32 * 1024 * 1024,   # headroom over v5e's 16 MiB default
        ),
    )(x2d)

    return out2d.reshape(orig_shape)


# Donate the input so the output/input aliasing is a true zero-copy: the
# input's HBM buffer is reused for the output.
node_id = jax.jit(node_id_forward, donate_argnums=(0,))


if __name__ == "__main__":
    key = jax.random.PRNGKey(0)
    # Small NCHW input consistent with a NAS architecture node.
    x = jax.random.normal(key, (2, 4, 16, 16), dtype=jnp.float32)

    # Keep a host copy for the correctness check: the device buffer of `x`
    # is donated to the kernel.
    x_host = np.asarray(jax.device_get(x))

    y = node_id(x)
    y = jax.block_until_ready(y)

    assert y.shape == x_host.shape
    assert y.dtype == x_host.dtype
    assert np.array_equal(np.asarray(y), x_host)

    print("KERNEL_OK")
</pallas_src>

<mosaic_0001>
module attributes {stable_mosaic.version = 11 : i64} {
  func.func @_identity_kernel(%arg0: i32, %arg1: memref<1x2048xf32, #tpu.memory_space<vmem>>, %arg2: memref<1x2048xf32, #tpu.memory_space<vmem>>) attributes {dimension_semantics = [#tpu.dimension_semantics<parallel>], iteration_bounds = array<i64: 1>, scalar_prefetch = 0 : i64, scratch_operands = 0 : i64, tpu.core_type = #tpu.core_type<tc>, window_params = [{transform_indices = @transform_0, window_bounds = array<i64: 1, 2048>}, {transform_indices = @transform_1, window_bounds = array<i64: 1, 2048>}]} {
    %c0 = arith.constant 0 : index
    %c0_0 = arith.constant 0 : index
    %0 = vector.load %arg1[%c0, %c0_0] : memref<1x2048xf32, #tpu.memory_space<vmem>>, vector<1x2048xf32>
    %c0_1 = arith.constant 0 : index
    %c0_2 = arith.constant 0 : index
    %1 = vector.load %arg2[%c0_1, %c0_2] : memref<1x2048xf32, #tpu.memory_space<vmem>>, vector<1x2048xf32>
    tpu.vector_store %arg2[%c0_1, %c0_2], %0 {strides = array<i32>} : memref<1x2048xf32, #tpu.memory_space<vmem>>, vector<1x2048xf32>,
    return
  }
  func.func @transform_0(%arg0: i32) -> (i32, i32) {
    %c0_i32 = arith.constant 0 : i32
    %c0_i32_0 = arith.constant 0 : i32
    return %arg0, %c0_i32 : i32, i32
  }
  func.func @transform_1(%arg0: i32) -> (i32, i32) {
    %c0_i32 = arith.constant 0 : i32
    %c0_i32_0 = arith.constant 0 : i32
    return %arg0, %c0_i32 : i32, i32
  }
}

</mosaic_0001>

<bundles_post_ra>
// kernel: node_id_forward.1
= control target key start
LH: loop header
LB: loop body
LE: loop exit
PB: predicated region body
PF: predicated region fallthrough
CT: control target
= control target key end

     0   :  { %s38_s0 = inlined_call_operand.vmem [shape: f32[1,2048], index: 0, kind: input, shape index: {}, may-alias: {0,1}]   ;;  %s39_s1 = inlined_call_operand.vmem [shape: f32[1,2048], index: 1, kind: output, shape index: {}, may-alias: {0,1}]  }
   0x1   :  { %v8_v0 = vld [vmem:[%s38_s0] sm:$0xff]  ;;  %v9_v1 = vld [vmem:[%s38_s0 + $0x8] sm:$0xff] }
   0x2   :  { %10 = vst [vmem:[%s39_s1] sm:$0xff] %v8_v0 }
   0x3   :  { %11 = vst [vmem:[%s39_s1 + $0x8] sm:$0xff] %v9_v1 }

</bundles_post_ra>
